<compile_context>
chip_gen: v5e
topology: v5e:2x2
jax: 0.10.0
libtpu: 0.0.40
codegen_flags: <defaults>
</compile_context>

<pallas_src>
import jax
import jax.numpy as jnp
from jax.experimental import pallas as pl
from jax.experimental.pallas import tpu as pltpu

H1 = 64      # net_1 hidden width
H2 = 32      # net_2 hidden width
H1P = 128    # lane-padded net_1 hidden
H2P = 128    # lane-padded net_2 hidden
NUP = 128    # lane-padded output width


def base_policy_kernel(x_ref,
                       wpk_ref, b1_ref,    # packed [w1 | K | w3]: (nx, H1P+NUP+H2P); b1 (1, H1P)
                       w23_ref, b23_ref,   # (H1P, H2P), (1, H2P)   [w2@w3 fused]
                       w4_ref, b4_ref,     # (H2P, NUP), (1, NUP)
                       o_ref):             # (TB, NUP)
    cd = wpk_ref.dtype                    # MXU operand dtype (bf16 fast path or f32 exact path)
    x = x_ref[...]                        # (TB, nx) f32
    xc = x.astype(cd)

    # One MXU push over the shared LHS x:
    #   lanes [0:H1P)            -> net_1 first linear (pre-activation)
    #   lanes [H1P:H1P+NUP)      -> linear gain K(x)   (no bias, no ReLU)
    #   lanes [H1P+NUP:)         -> x @ w3             (residual folded into net_2)
    h = jnp.dot(xc, wpk_ref[...], preferred_element_type=jnp.float32)
    h1 = jnp.maximum(h[:, :H1P] + b1_ref[...], 0.0)        # f32 elementwise
    k_out = h[:, H1P:H1P + NUP]
    xw3 = h[:, H1P + NUP:]

    # Fused net_1-second-linear + residual + net_2-first-linear:
    #   ReLU((h1@w2 + x + b2) @ w3 + b3) == ReLU(h1 @ (w2@w3) + x@w3 + (b2@w3 + b3))
    h2 = jnp.maximum(
        jnp.dot(h1.astype(cd), w23_ref[...], preferred_element_type=jnp.float32)
        + xw3 + b23_ref[...], 0.0)

    nn_out = jnp.dot(h2.astype(cd), w4_ref[...],
                     preferred_element_type=jnp.float32) + b4_ref[...]

    o_ref[...] = (k_out + nn_out).astype(o_ref.dtype)


def pack_params(raw_params, nx, nu, compute_dtype):
    """Host-side, call once: pad to 128-lane blocks, fuse [w1|K|w3] and w2@w3."""
    (w1, b1, w2, b2, w3, b3, w4, b4, k) = raw_params
    assert H1 <= H1P and H2 <= H2P and nu <= NUP
    f32 = jnp.float32

    wpk = jnp.zeros((nx, H1P + NUP + H2P), f32)
    wpk = wpk.at[:, :H1].set(w1)
    wpk = wpk.at[:, H1P:H1P + nu].set(k)
    wpk = wpk.at[:, H1P + NUP:H1P + NUP + H2].set(w3)

    b1p = jnp.zeros((1, H1P), f32).at[:, :H1].set(b1)

    w23 = w2 @ w3                         # (64, 32)  algebraic fusion of net_1 2nd linear
    b23 = b2 @ w3 + b3                    # (1, 32)
    w23p = jnp.zeros((H1P, H2P), f32).at[:H1, :H2].set(w23)
    b23p = jnp.zeros((1, H2P), f32).at[:, :H2].set(b23)

    w4p = jnp.zeros((H2P, NUP), f32).at[:H2, :nu].set(w4)
    b4p = jnp.zeros((1, NUP), f32).at[:, :nu].set(b4)

    cd = compute_dtype
    # Biases stay f32 (elementwise path); MXU operands take the compute dtype.
    return (wpk.astype(cd), b1p, w23p.astype(cd), b23p, w4p.astype(cd), b4p)


def choose_batch_tile(B, max_block=1024, target_grid=2):
    """Sublane-aligned batch tile.

    Targets `target_grid` (=2) balanced grid steps so the 'parallel' batch axis still
    feeds both TensorCores on v7x, while the tile is large enough to amortize the
    ~0.35 us per-grid-step overhead on v5e/v6e. Capped at `max_block` rows
    (~5-6 KiB VMEM per row keeps us well under v5e's 16 MiB scoped-VMEM default).
    For batches that are a multiple of 16 this yields b_pad == B (no wrapper pad).
    """
    b8 = ((B + 7) // 8) * 8                 # sublane-aligned batch
    tb = -(-b8 // target_grid)              # ceil
    tb = ((tb + 7) // 8) * 8                # multiple of 8 (tiling constraint)
    tb = max(8, min(tb, max_block, b8))
    b_pad = -(-b8 // tb) * tb
    return tb, b_pad


def base_policy_forward(x, packed_params, *, nu, max_block=1024):
    """x: (B, nx) f32; packed_params from pack_params (packed ONCE, outside this call)."""
    B, nx = x.shape
    wpk, b1p, w23p, b23p, w4p, b4p = packed_params

    tb, b_pad = choose_batch_tile(B, max_block=max_block)
    if b_pad != B:
        x = jnp.pad(x, ((0, b_pad - B), (0, 0)))

    # Weights/biases: constant (0,0) block index -> VMEM-resident across grid steps.
    const = lambda a: pl.BlockSpec(a.shape, lambda i: (0, 0))

    out = pl.pallas_call(
        base_policy_kernel,
        out_shape=jax.ShapeDtypeStruct((b_pad, NUP), jnp.float32),
        grid=(b_pad // tb,),
        in_specs=[
            pl.BlockSpec((tb, nx), lambda i: (i, 0)),
            const(wpk), const(b1p),
            const(w23p), const(b23p),
            const(w4p), const(b4p),
        ],
        out_specs=pl.BlockSpec((tb, NUP), lambda i: (i, 0)),
        compiler_params=pltpu.CompilerParams(
            # Batch tiles are independent -> shard across both TCs on v7x.
            dimension_semantics=("parallel",)),
    )(x, wpk, b1p, w23p, b23p, w4p, b4p)

    return out[:B, :nu]


def make_params(key, nx, nu):
    """Deterministic synthetic parameters (weights stored (in, out), biases (1, out))."""
    ks = jax.random.split(key, 9)
    scale = 0.1
    w1 = scale * jax.random.normal(ks[0], (nx, 64), jnp.float32)
    b1 = scale * jax.random.normal(ks[1], (1, 64), jnp.float32)
    w2 = scale * jax.random.normal(ks[2], (64, nx), jnp.float32)
    b2 = scale * jax.random.normal(ks[3], (1, nx), jnp.float32)
    w3 = scale * jax.random.normal(ks[4], (nx, 32), jnp.float32)
    b3 = scale * jax.random.normal(ks[5], (1, 32), jnp.float32)
    w4 = scale * jax.random.normal(ks[6], (32, nu), jnp.float32)
    b4 = scale * jax.random.normal(ks[7], (1, nu), jnp.float32)
    k  = scale * jax.random.normal(ks[8], (nx, nu), jnp.float32)
    # TODO(synk): weights_init uses control.dlqr (DLQR solve); synthetic K is used instead.
    return (w1, b1, w2, b2, w3, b3, w4, b4, k)


def reference_forward(x, params):
    """Pure-JAX f32 reference with the original module's exact algebra."""
    (w1, b1, w2, b2, w3, b3, w4, b4, k) = params
    h1 = jnp.maximum(x @ w1 + b1, 0.0)
    x1 = h1 @ w2 + x + b2
    h2 = jnp.maximum(x1 @ w3 + b3, 0.0)
    return x @ k + h2 @ w4 + b4


def reference_forward_fused_bf16(x, params):
    """Mirrors the kernel's fused bf16-operand / f32-accumulate path."""
    (w1, b1, w2, b2, w3, b3, w4, b4, k) = params
    q = lambda a: a.astype(jnp.bfloat16)
    dot = lambda a, b: jnp.dot(q(a), q(b), preferred_element_type=jnp.float32)
    w23 = w2 @ w3
    b23 = b2 @ w3 + b3
    h1 = jnp.maximum(dot(x, w1) + b1, 0.0)
    h2 = jnp.maximum(dot(h1, w23) + dot(x, w3) + b23, 0.0)
    return dot(x, k) + dot(h2, w4) + b4


if __name__ == "__main__":
    nx, nu = 32, 8
    key = jax.random.PRNGKey(0)
    kx, kp = jax.random.split(key)
    params = make_params(kp, nx, nu)

    fwd = jax.jit(base_policy_forward, static_argnames=("nu", "max_block"))

    # --- exact-semantics path (f32 MXU operands) vs original-module f32 reference ---
    batch = 512                                    # tb=256, grid=2, no wrapper pad
    x = jax.random.normal(kx, (batch, nx), jnp.float32)
    packed_f32 = pack_params(params, nx, nu, jnp.float32)   # packed once, reused per call
    out_f32 = jax.block_until_ready(fwd(x, packed_f32, nu=nu))
    assert out_f32.shape == (batch, nu)
    assert jnp.allclose(out_f32, reference_forward(x, params), atol=1e-4, rtol=1e-4)

    # --- small / ragged batch (exercises the pad path and tiny tiles) ---
    x_small = jax.random.normal(kx, (10, nx), jnp.float32)
    out_small = jax.block_until_ready(fwd(x_small, packed_f32, nu=nu))
    assert out_small.shape == (10, nu)
    assert jnp.allclose(out_small, reference_forward(x_small, params),
                        atol=1e-4, rtol=1e-4)

    # --- performance path (bf16 MXU operands, f32 accumulation) ---
    packed_bf16 = pack_params(params, nx, nu, jnp.bfloat16)
    out_bf16 = jax.block_until_ready(fwd(x, packed_bf16, nu=nu))
    assert out_bf16.shape == (batch, nu)
    assert jnp.allclose(out_bf16, reference_forward_fused_bf16(x, params),
                        atol=2e-2, rtol=2e-2)
    # Loose anchor against the exact f32 semantics (bf16 quantization noise only).
    assert jnp.allclose(out_bf16, reference_forward(x, params), atol=1e-1, rtol=1e-1)

    print("KERNEL_OK")
</pallas_src>

<mosaic_0001>
module attributes {stable_mosaic.version = 11 : i64} {
  func.func @base_policy_kernel(%arg0: i32, %arg1: memref<256x32xf32, #tpu.memory_space<vmem>>, %arg2: memref<32x384xf32, #tpu.memory_space<vmem>>, %arg3: memref<1x128xf32, #tpu.memory_space<vmem>>, %arg4: memref<128x128xf32, #tpu.memory_space<vmem>>, %arg5: memref<1x128xf32, #tpu.memory_space<vmem>>, %arg6: memref<128x128xf32, #tpu.memory_space<vmem>>, %arg7: memref<1x128xf32, #tpu.memory_space<vmem>>, %arg8: memref<256x128xf32, #tpu.memory_space<vmem>>) attributes {dimension_semantics = [#tpu.dimension_semantics<parallel>], iteration_bounds = array<i64: 2>, scalar_prefetch = 0 : i64, scratch_operands = 0 : i64, tpu.core_type = #tpu.core_type<tc>, window_params = [{transform_indices = @transform_0, window_bounds = array<i64: 256, 32>}, {pipeline_mode = #tpu.pipeline_mode<synchronous>, transform_indices = @transform_1, window_bounds = array<i64: 32, 384>}, {pipeline_mode = #tpu.pipeline_mode<synchronous>, transform_indices = @transform_2, window_bounds = array<i64: 1, 128>}, {pipeline_mode = #tpu.pipeline_mode<synchronous>, transform_indices = @transform_3, window_bounds = array<i64: 128, 128>}, {pipeline_mode = #tpu.pipeline_mode<synchronous>, transform_indices = @transform_4, window_bounds = array<i64: 1, 128>}, {pipeline_mode = #tpu.pipeline_mode<synchronous>, transform_indices = @transform_5, window_bounds = array<i64: 128, 128>}, {pipeline_mode = #tpu.pipeline_mode<synchronous>, transform_indices = @transform_6, window_bounds = array<i64: 1, 128>}, {transform_indices = @transform_7, window_bounds = array<i64: 256, 128>}]} {
    %c0 = arith.constant 0 : index
    %c0_0 = arith.constant 0 : index
    %0 = vector.load %arg1[%c0, %c0_0] : memref<256x32xf32, #tpu.memory_space<vmem>>, vector<256x32xf32>
    %c0_1 = arith.constant 0 : index
    %c0_2 = arith.constant 0 : index
    %1 = vector.load %arg2[%c0_1, %c0_2] : memref<32x384xf32, #tpu.memory_space<vmem>>, vector<32x384xf32>
    %cst = arith.constant dense<0.000000e+00> : vector<256x384xf32>
    %2 = tpu.matmul %0, %1, %cst {dimension_numbers = #tpu.dot_dimension_numbers<[1], [0], [0], [1], [0, 0, 1, 1], [], []>} : vector<256x32xf32>, vector<32x384xf32>, vector<256x384xf32> -> vector<256x384xf32>
    %3 = vector.extract_strided_slice %2 {offsets = [0, 0], sizes = [256, 128], strides = [1, 1]} : vector<256x384xf32> to vector<256x128xf32>
    %c0_3 = arith.constant 0 : index
    %c0_4 = arith.constant 0 : index
    %4 = vector.load %arg3[%c0_3, %c0_4] : memref<1x128xf32, #tpu.memory_space<vmem>>, vector<1x128xf32>
    %5 = vector.broadcast %4 : vector<1x128xf32> to vector<256x128xf32>
    %6 = arith.addf %3, %5 : vector<256x128xf32>
    %cst_5 = arith.constant 0.000000e+00 : f32
    %7 = vector.broadcast %cst_5 : f32 to vector<256x128xf32>
    %8 = arith.maximumf %6, %7 : vector<256x128xf32>
    %9 = vector.extract_strided_slice %2 {offsets = [0, 128], sizes = [256, 128], strides = [1, 1]} : vector<256x384xf32> to vector<256x128xf32>
    %10 = vector.extract_strided_slice %2 {offsets = [0, 256], sizes = [256, 128], strides = [1, 1]} : vector<256x384xf32> to vector<256x128xf32>
    %c0_6 = arith.constant 0 : index
    %c0_7 = arith.constant 0 : index
    %11 = vector.load %arg4[%c0_6, %c0_7] : memref<128x128xf32, #tpu.memory_space<vmem>>, vector<128x128xf32>
    %cst_8 = arith.constant dense<0.000000e+00> : vector<256x128xf32>
    %12 = tpu.matmul %8, %11, %cst_8 {dimension_numbers = #tpu.dot_dimension_numbers<[1], [0], [0], [1], [0, 0, 1, 1], [], []>} : vector<256x128xf32>, vector<128x128xf32>, vector<256x128xf32> -> vector<256x128xf32>
    %13 = arith.addf %12, %10 : vector<256x128xf32>
    %c0_9 = arith.constant 0 : index
    %c0_10 = arith.constant 0 : index
    %14 = vector.load %arg5[%c0_9, %c0_10] : memref<1x128xf32, #tpu.memory_space<vmem>>, vector<1x128xf32>
    %15 = vector.broadcast %14 : vector<1x128xf32> to vector<256x128xf32>
    %16 = arith.addf %13, %15 : vector<256x128xf32>
    %cst_11 = arith.constant 0.000000e+00 : f32
    %17 = vector.broadcast %cst_11 : f32 to vector<256x128xf32>
    %18 = arith.maximumf %16, %17 : vector<256x128xf32>
    %c0_12 = arith.constant 0 : index
    %c0_13 = arith.constant 0 : index
    %19 = vector.load %arg6[%c0_12, %c0_13] : memref<128x128xf32, #tpu.memory_space<vmem>>, vector<128x128xf32>
    %cst_14 = arith.constant dense<0.000000e+00> : vector<256x128xf32>
    %20 = tpu.matmul %18, %19, %cst_14 {dimension_numbers = #tpu.dot_dimension_numbers<[1], [0], [0], [1], [0, 0, 1, 1], [], []>} : vector<256x128xf32>, vector<128x128xf32>, vector<256x128xf32> -> vector<256x128xf32>
    %c0_15 = arith.constant 0 : index
    %c0_16 = arith.constant 0 : index
    %21 = vector.load %arg7[%c0_15, %c0_16] : memref<1x128xf32, #tpu.memory_space<vmem>>, vector<1x128xf32>
    %22 = vector.broadcast %21 : vector<1x128xf32> to vector<256x128xf32>
    %23 = arith.addf %20, %22 : vector<256x128xf32>
    %24 = arith.addf %9, %23 : vector<256x128xf32>
    %c0_17 = arith.constant 0 : index
    %c0_18 = arith.constant 0 : index
    %25 = vector.load %arg8[%c0_17, %c0_18] : memref<256x128xf32, #tpu.memory_space<vmem>>, vector<256x128xf32>
    tpu.vector_store %arg8[%c0_17, %c0_18], %24 {strides = array<i32>} : memref<256x128xf32, #tpu.memory_space<vmem>>, vector<256x128xf32>,
    return
  }
  func.func @transform_0(%arg0: i32) -> (i32, i32) {
    %c0_i32 = arith.constant 0 : i32
    %c0_i32_0 = arith.constant 0 : i32
    return %arg0, %c0_i32 : i32, i32
  }
  func.func @transform_1(%arg0: i32) -> (i32, i32) {
    %c0_i32 = arith.constant 0 : i32
    %c0_i32_0 = arith.constant 0 : i32
    %c0_i32_1 = arith.constant 0 : i32
    return %c0_i32, %c0_i32_0 : i32, i32
  }
  func.func @transform_2(%arg0: i32) -> (i32, i32) {
    %c0_i32 = arith.constant 0 : i32
    %c0_i32_0 = arith.constant 0 : i32
    %c0_i32_1 = arith.constant 0 : i32
    return %c0_i32, %c0_i32_0 : i32, i32
  }
  func.func @transform_3(%arg0: i32) -> (i32, i32) {
    %c0_i32 = arith.constant 0 : i32
    %c0_i32_0 = arith.constant 0 : i32
    %c0_i32_1 = arith.constant 0 : i32
    return %c0_i32, %c0_i32_0 : i32, i32
  }
  func.func @transform_4(%arg0: i32) -> (i32, i32) {
    %c0_i32 = arith.constant 0 : i32
    %c0_i32_0 = arith.constant 0 : i32
    %c0_i32_1 = arith.constant 0 : i32
    return %c0_i32, %c0_i32_0 : i32, i32
  }
  func.func @transform_5(%arg0: i32) -> (i32, i32) {
    %c0_i32 = arith.constant 0 : i32
    %c0_i32_0 = arith.constant 0 : i32
    %c0_i32_1 = arith.constant 0 : i32
    return %c0_i32, %c0_i32_0 : i32, i32
  }
  func.func @transform_6(%arg0: i32) -> (i32, i32) {
    %c0_i32 = arith.constant 0 : i32
    %c0_i32_0 = arith.constant 0 : i32
    %c0_i32_1 = arith.constant 0 : i32
    return %c0_i32, %c0_i32_0 : i32, i32
  }
  func.func @transform_7(%arg0: i32) -> (i32, i32) {
    %c0_i32 = arith.constant 0 : i32
    %c0_i32_0 = arith.constant 0 : i32
    return %arg0, %c0_i32 : i32, i32
  }
}

</mosaic_0001>

<bundles_post_ra>
// kernel: base_policy_forward.1
= control target key start
LH: loop header
LB: loop body
LE: loop exit
PB: predicated region body
PF: predicated region fallthrough
CT: control target
= control target key end

     0   :  { %s1474_s24 = smov 0   ;;  %s2107_s0 = inlined_call_operand.vmem [shape: f32[512,32], index: 0, kind: input, shape index: {}]   ;;  %s2108_s1 = inlined_call_operand.vmem [shape: f32[32,384], index: 1, kind: input, shape index: {}]   ;;  %s2109_s2 = inlined_call_operand.vmem [shape: f32[1,128], index: 2, kind: input, shape index: {}]   ;;  %s2110_s3 = inlined_call_operand.vmem [shape: f32[128,128], index: 3, kind: input, shape index: {}]   ;;  %s2111_s4 = inlined_call_operand.vmem [shape: f32[1,128], index: 4, kind: input, shape index: {}]   ;;  %s2112_s5 = inlined_call_operand.vmem [shape: f32[128,128], index: 5, kind: input, shape index: {}]   ;;  %s2113_s6 = inlined_call_operand.vmem [shape: f32[1,128], index: 6, kind: input, shape index: {}]   ;;  %s2114_s7 = inlined_call_operand.vmem [shape: f32[512,128], index: 7, kind: output, shape index: {}]  }
   0x1 LB: > { %s1280_s25 = sadd.s32 4294967295, %s1432_s24   ;;  %p1284_p0 = scmp.ge.s32.totalorder %s1432_s24, 1  ;;  %s1432_s24 = sphi %s1474_s24, %s17_s24  }
   0x2   : > { %p238_p1 = scmp.lt.s32.totalorder %s1432_s24, 3 }
   0x4   : > { %p239_p2 = pnand %p1284_p0, %p238_p1 }
   0x5   : > { %s1285_s30 = sshll.u32 (!%p239_p2), %s1280_s25, 5 }
   0x6   : > { %242 = sbr.rel (%p239_p2) target bundleno = 672 (0x2a0), region = 48  ;;  %p271_p3 = scmp.lt.s32.totalorder (!%p239_p2), %s1285_s30, 63 }
   0xb   : > { %v323_v0 = vld [vmem:[%s2108_s1 + $0x48] sm:$0xff]  ;;  %v320_v1 = vld [vmem:[%s2108_s1 + $0x30] sm:$0xff]  ;;  %v317_v2 = vld [vmem:[%s2108_s1 + $0x18] sm:$0xff]  ;;  %s2116_s30 = smov (!%p271_p3, %s1285_s30), 63  ;;  %vm326_vm0 = vcmask 261120  }
   0xc   : > { %435 = vmatpush.msra.mxu0 %v323_v0  ;;  %1388 = vmatpush.msra.mxu2 %v323_v0  ;;  %v314_v3 = vld [vmem:[%s2108_s1] sm:$0xff]  ;;  %s1286_s12 = sshll.u32 %s2116_s30, 3  ;;  %v325_v10 = vld [vmem:[%s2108_s1 + $0x58] sm:$0xff]  ;;  %v844_v15 = vld [vmem:[%s2110_s3 + $0x70] sm:$0xff] }
   0xd   : > { %1387 = vmatpush.msra.mxu1 %v323_v0  ;;  %1389 = vmatpush.msra.mxu3 %v323_v0  ;;  %s1502_s15 = scalar_lea.vmem %s2107_s0, %s1286_s12  ;;  %v322_v13 = vld [vmem:[%s2108_s1 + $0x40] sm:$0xff]  ;;  %v845_v14 = vld [vmem:[%s2110_s3 + $0x78] sm:$0xff]  ;;  %v843_v17 = vld [vmem:[%s2110_s3 + $0x68] sm:$0xff]  ;;  %s2004_s26 = scalar_lea.vmem %s2114_s7, %s1286_s12 }
   0xe   : > { %436 = vmatpush.msra.mxu0 %v320_v1  ;;  %1391 = vmatpush.msra.mxu2 %v320_v1  ;;  %v1505_v4 = vld [vmem:[%s1502_s15] sm:$0xff]  ;;  %v1510_v5 = vld [vmem:[%s1502_s15 + $0x8] sm:$0xff]  ;;  %v1515_v6 = vld [vmem:[%s1502_s15 + $0x10] sm:$0xff] }
   0xf   : > { %1390 = vmatpush.msra.mxu1 %v320_v1  ;;  %1392 = vmatpush.msra.mxu3 %v320_v1  ;;  %v1520_v7 = vld [vmem:[%s1502_s15 + $0x18] sm:$0xff]  ;;  %v1525_v8 = vld [vmem:[%s1502_s15 + $0x20] sm:$0xff]  ;;  %v1530_v9 = vld [vmem:[%s1502_s15 + $0x90] sm:$0xff] }
  0x10   : > { %437 = vmatpush.msra.mxu0 %v317_v2  ;;  %1394 = vmatpush.msra.mxu2 %v317_v2  ;;  %v1536_v11 = vld [vmem:[%s1502_s15 + $0x48] sm:$0xff]  ;;  %v1543_v12 = vld [vmem:[%s1502_s15 + $0xd0] sm:$0xff]  ;;  %v1563_v18 = vld [vmem:[%s1502_s15 + $0x98] sm:$0xff] }
  0x11   : > { %1393 = vmatpush.msra.mxu1 %v317_v2  ;;  %1395 = vmatpush.msra.mxu3 %v317_v2  ;;  %v1557_v16 = vld [vmem:[%s1502_s15 + $0x28] sm:$0xff]  ;;  %v1566_v19 = vld [vmem:[%s1502_s15 + $0x50] sm:$0xff]  ;;  %v842_v21 = vld [vmem:[%s2110_s3 + $0x60] sm:$0xff] }
  0x12   : > { %438 = vmatpush.msra.mxu0 %v314_v3  ;;  %1397 = vmatpush.msra.mxu2 %v314_v3  ;;  %v319_v20 = vld [vmem:[%s2108_s1 + $0x28] sm:$0xff]  ;;  %v1577_v22 = vld [vmem:[%s1502_s15 + $0xd8] sm:$0xff]  ;;  %v840_v24 = vld [vmem:[%s2110_s3 + $0x50] sm:$0xff] }
  0x13   : > { %1289 = vmatmul.msk.f32.vlgmr.msra.gmra.mxu0 %vm326_vm0, %v1505_v4  ;;  %1396 = vmatpush.msra.mxu1 %v314_v3  ;;  %v841_v23 = vld [vmem:[%s2110_s3 + $0x58] sm:$0xff]  ;;  %v1592_v25 = vld [vmem:[%s1502_s15 + $0x30] sm:$0xff]  ;;  %v839_v26 = vld [vmem:[%s2110_s3 + $0x48] sm:$0xff] }
  0x14   : > { %1398 = vmatpush.msra.mxu3 %v314_v3  ;;  %1307 = vmatmul.msk.f32.vlgmr.msra.gmra.mxu2 %vm326_vm0, %v1530_v9  ;;  %v1598_v27 = vld [vmem:[%s1502_s15 + $0xa0] sm:$0xff]  ;;  %v1601_v28 = vld [vmem:[%s1502_s15 + $0x58] sm:$0xff]  ;;  %v316_v32 = vld [vmem:[%s2108_s1 + $0x10] sm:$0xff] }
  0x15   : > { %1298 = vmatmul.msk.f32.vlgmr.msra.gmra.mxu1 %vm326_vm0, %v1536_v11  ;;  %661 = vmatpush.msrb.mxu2 %v325_v10  ;;  %v838_v29 = vld [vmem:[%s2110_s3 + $0x40] sm:$0xff]  ;;  %v837_v31 = vld [vmem:[%s2110_s3 + $0x38] sm:$0xff]  ;;  %v836_v33 = vld [vmem:[%s2110_s3 + $0x30] sm:$0xff] }
  0x16   : > { %1315 = vmatmul.msk.f32.vlgmr.msra.gmra.mxu3 %vm326_vm0, %v1543_v12  ;;  %v1609_v30 = vld [vmem:[%s1502_s15 + $0xe0] sm:$0xff]  ;;  %v1627_v34 = vld [vmem:[%s1502_s15 + $0x38] sm:$0xff]  ;;  %v835_v35 = vld [vmem:[%s2110_s3 + $0x28] sm:$0xff] }
  0x17   : > { %662 = vmatpush.msrb.mxu2 %v322_v13  ;;  %846 = vmatpush.msrb.mxu3 %v845_v14  ;;  %v1633_v36 = vld [vmem:[%s1502_s15 + $0xa8] sm:$0xff]  ;;  %v1636_v37 = vld [vmem:[%s1502_s15 + $0x60] sm:$0xff]  ;;  %v833_v40 = vld [vmem:[%s2110_s3 + $0x18] sm:$0xff] }
  0x18   : > { %v834_v38 = vld [vmem:[%s2110_s3 + $0x20] sm:$0xff]  ;;  %v1644_v39 = vld [vmem:[%s1502_s15 + $0xe8] sm:$0xff]  ;;  %v832_v41 = vld [vmem:[%s2110_s3 + $0x10] sm:$0xff] }
  0x19   : > { %847 = vmatpush.msrb.mxu3 %v844_v15  ;;  %663 = vmatpush.msrb.mxu2 %v319_v20  ;;  %v1659_v42 = vld [vmem:[%s1502_s15 + $0x40] sm:$0xff]  ;;  %v831_v43 = vld [vmem:[%s2110_s3 + $0x8] sm:$0xff]  ;;  %v1665_v44 = vld [vmem:[%s1502_s15 + $0xb0] sm:$0xff] }
  0x1a   : > { %v1668_v45 = vld [vmem:[%s1502_s15 + $0x68] sm:$0xff]  ;;  %v1673_v46 = vld [vmem:[%s1502_s15 + $0xf0] sm:$0xff]  ;;  %v1682_v47 = vld [vmem:[%s1502_s15 + $0xb8] sm:$0xff] }
  0x1b   : > { %1290 = vmatmul.msk.f32.gmra.mxu0 %vm326_vm0, %v1510_v5  ;;  %848 = vmatpush.msrb.mxu3 %v843_v17  ;;  %v1685_v48 = vld [vmem:[%s1502_s15 + $0x70] sm:$0xff]  ;;  %v1688_v49 = vld [vmem:[%s1502_s15 + $0xf8] sm:$0xff]  ;;  %v1697_v50 = vld [vmem:[%s1502_s15 + $0xc0] sm:$0xff] }
  0x1c   : > { %1308 = vmatmul.msk.f32.gmra.mxu2 %vm326_vm0, %v1563_v18  ;;  %v1700_v51 = vld [vmem:[%s1502_s15 + $0x78] sm:$0xff]  ;;  %v1707_v52 = vld [vmem:[%s1502_s15 + $0xc8] sm:$0xff]  ;;  %v1712_v53 = vld [vmem:[%s1502_s15 + $0x80] sm:$0xff] }
  0x1d   : > { %1299 = vmatmul.msk.f32.gmra.mxu1 %vm326_vm0, %v1566_v19  ;;  %849 = vmatpush.msrb.mxu3 %v842_v21  ;;  %v830_v54 = vld [vmem:[%s2110_s3] sm:$0xff]  ;;  %v1722_v55 = vld [vmem:[%s1502_s15 + $0x88] sm:$0xff] }
  0x1e   : > { %1316 = vmatmul.msk.f32.gmra.mxu3 %vm326_vm0, %v1577_v22  ;;  %664 = vmatpush.msrb.mxu2 %v316_v32  ;;  %v1735_v56 = vld [vmem:[%s2109_s2] ss:$0 sm:$0xff] }
  0x1f   : > { %850 = vmatpush.msrb.mxu3 %v841_v23 }
  0x21   : > { %851 = vmatpush.msrb.mxu3 %v840_v24  ;;  %v324_v24 = vld [vmem:[%s2108_s1 + $0x50] sm:$0xff] }
  0x22   : > { %548 = vmatpush.msrb.mxu1 %v324_v24 }
  0x23   : > { %1291 = vmatmul.msk.f32.gmra.mxu0 %vm326_vm0, %v1515_v6  ;;  %852 = vmatpush.msrb.mxu3 %v839_v26 }
  0x24   : > { %1309 = vmatmul.msk.f32.gmra.mxu2 %vm326_vm0, %v1598_v27 }
  0x25   : > { %1300 = vmatmul.msk.f32.gmra.mxu1 %vm326_vm0, %v1601_v28  ;;  %853 = vmatpush.msrb.mxu3 %v838_v29 }
  0x26   : > { %1317 = vmatmul.msk.f32.gmra.mxu3 %vm326_vm0, %v1609_v30 }
  0x27   : > { %854 = vmatpush.msrb.mxu3 %v837_v31 }
  0x29   : > { %855 = vmatpush.msrb.mxu3 %v836_v33 }
  0x2b   : > { %1292 = vmatmul.msk.f32.gmra.mxu0 %vm326_vm0, %v1520_v7  ;;  %856 = vmatpush.msrb.mxu3 %v835_v35  ;;  %v1042_v35 = vld [vmem:[%s2112_s5 + $0x78] sm:$0xff] }
  0x2c   : > { %1310 = vmatmul.msk.f32.gmra.mxu2 %vm326_vm0, %v1633_v36  ;;  %1047 = vmatpush.msrb.mxu0 %v1042_v35 }
  0x2d   : > { %1301 = vmatmul.msk.f32.gmra.mxu1 %vm326_vm0, %v1636_v37  ;;  %857 = vmatpush.msrb.mxu3 %v834_v38  ;;  %v1041_v38 = vld [vmem:[%s2112_s5 + $0x70] sm:$0xff] }
  0x2e   : > { %1318 = vmatmul.msk.f32.gmra.mxu3 %vm326_vm0, %v1644_v39  ;;  %1048 = vmatpush.msrb.mxu0 %v1041_v38 }
  0x2f   : > { %858 = vmatpush.msrb.mxu3 %v833_v40 }
  0x31   : > { %859 = vmatpush.msrb.mxu3 %v832_v41 }
  0x33   : > { %1293 = vmatmul.msk.f32.gmra.mxu0 %vm326_vm0, %v1525_v8  ;;  %860 = vmatpush.msrb.mxu3 %v831_v43 }
  0x34   : > { %1311 = vmatmul.msk.f32.gmra.mxu2 %vm326_vm0, %v1665_v44 }
  0x35   : > { %1302 = vmatmul.msk.f32.gmra.mxu1 %vm326_vm0, %v1668_v45  ;;  %861 = vmatpush.msrb.mxu3 %v830_v54 }
  0x36   : > { %1319 = vmatmul.msk.f32.gmra.mxu3 %vm326_vm0, %v1673_v46 }
  0x37   : > { %1399 = vmatpush.msra.mxu3 %v1042_v35  ;;  %v1034_v35 = vld [vmem:[%s2112_s5 + $0x38] sm:$0xff] }
  0x39   : > { %1400 = vmatpush.msra.mxu3 %v1041_v38 }
  0x3b   : > { %1294 = vmatmul.msk.f32.gmra.mxu0 %vm326_vm0, %v1557_v16 }
  0x3c   : > { %1312 = vmatmul.msk.f32.gmra.mxu2 %vm326_vm0, %v1682_v47 }
  0x3d   : > { %1303 = vmatmul.msk.f32.gmra.mxu1 %vm326_vm0, %v1685_v48 }
  0x3e   : > { %1320 = vmatmul.msk.f32.gmra.mxu3 %vm326_vm0, %v1688_v49 }
  0x43   : > { %1295 = vmatmul.msk.f32.gmra.mxu0 %vm326_vm0, %v1592_v25 }
  0x44   : > { %1313 = vmatmul.msk.f32.gmra.mxu2 %vm326_vm0, %v1697_v50 }
  0x45   : > { %1304 = vmatmul.msk.f32.gmra.mxu1 %vm326_vm0, %v1700_v51 }
  0x4b   : > { %1296 = vmatmul.msk.f32.gmra.mxu0 %vm326_vm0, %v1627_v34 }
  0x4c   : > { %1314 = vmatmul.msk.f32.gmra.mxu2 %vm326_vm0, %v1707_v52 }
  0x4d   : > { %1305 = vmatmul.msk.f32.gmra.mxu1 %vm326_vm0, %v1712_v53 }
  0x53   : > { %1297 = vmatmul.msk.f32.gmra.mxu0 %vm326_vm0, %v1659_v42 }
  0x54   : > { %1353 = vmatmul.msk.f32.vlgmr.msrb.gmra.mxu2 %vm326_vm0, %v1505_v4 }
  0x55   : > { %1306 = vmatmul.msk.f32.gmra.mxu1 %vm326_vm0, %v1722_v55 }
  0x5c   : > { %1354 = vmatmul.msk.f32.gmra.mxu2 %vm326_vm0, %v1510_v5 }
  0x64   : > { %1355 = vmatmul.msk.f32.gmra.mxu2 %vm326_vm0, %v1515_v6 }
  0x6c   : > { %1356 = vmatmul.msk.f32.gmra.mxu2 %vm326_vm0, %v1520_v7 }
  0x74   : > { %1357 = vmatmul.msk.f32.gmra.mxu2 %vm326_vm0, %v1525_v8 }
  0x7c   : > { %1358 = vmatmul.msk.f32.gmra.mxu2 %vm326_vm0, %v1557_v16 }
  0x84   : > { %1359 = vmatmul.msk.f32.gmra.mxu2 %vm326_vm0, %v1592_v25 }
  0x8c   : > { %1360 = vmatmul.msk.f32.gmra.mxu2 %vm326_vm0, %v1627_v34 }
  0x90   : > { %v440_v57 = vpop.f32.mrf.mxu0 }
  0x91   : > { %v766_v58 = vadd.f32 %v1735_v56, %v440_v57 }
  0x92   : > { %v467_v32 = vpop.f32.mrf.mxu1 }
  0x93   : > { %v798_v59 = vmax.f32 %v766_v58, 0.0  ;;  %v1040_v58 = vld [vmem:[%s2112_s5 + $0x68] sm:$0xff] }
  0x94   : > { %1361 = vmatmul.msk.f32.gmra.mxu2 %vm326_vm0, %v1659_v42  ;;  %1049 = vmatpush.msrb.mxu0 %v1040_v58 }
  0x95   : > { %862 = vmatmul.f32.vlgmr.msrb.gmra.mxu3 %v798_v59  ;;  %v321_v59 = vld [vmem:[%s2108_s1 + $0x38] sm:$0xff] }
  0x96   : > { %549 = vmatpush.msrb.mxu1 %v321_v59  ;;  %1401 = vmatpush.msra.mxu3 %v1040_v58  ;;  %v1033_v58 = vld [vmem:[%s2112_s5 + $0x30] sm:$0xff]  ;;  %v1032_v59 = vld [vmem:[%s2112_s5 + $0x28] sm:$0xff] }
  0x97   : > { %v1752_v17 = vpop.f32.mrf.mxu2 }
  0x98   : > { %v443_v60 = vpop.f32.mrf.mxu0 }
  0x99   : > { %v767_v61 = vadd.f32 %v1735_v56, %v443_v60  ;;  %v1039_v60 = vld [vmem:[%s2112_s5 + $0x60] sm:$0xff] }
  0x9a   : > { %v470_v57 = vpop.f32.mrf.mxu1  ;;  %1050 = vmatpush.msrb.mxu0 %v1039_v60  ;;  %1402 = vmatpush.msra.mxu3 %v1039_v60  ;;  %v315_v60 = vld [vmem:[%s2108_s1 + $0x8] sm:$0xff] }
  0x9b   : > { %v799_v62 = vmax.f32 %v767_v61, 0.0 }
  0x9c   : > { %1362 = vmatmul.msk.f32.gmra.mxu2 %vm326_vm0, %v1536_v11 }
  0x9d   : > { %865 = vmatmul.f32.gmra.mxu3 %v799_v62 }
  0x9f   : > { %v1760_v26 = vpop.f32.mrf.mxu2 }
  0xa0   : > { %v446_v63 = vpop.f32.mrf.mxu0 }
  0xa1   : > { %v768_v0 = vadd.f32 %v1735_v56, %v446_v63 }
  0xa3   : > { %v800_v1 = vmax.f32 %v768_v0, 0.0 }
  0xa4   : > { %1363 = vmatmul.msk.f32.gmra.mxu2 %vm326_vm0, %v1566_v19 }
  0xa5   : > { %868 = vmatmul.f32.gmra.mxu3 %v800_v1  ;;  %v775_v1 = vadd.f32 %v1735_v56, %v467_v32 }
  0xa7   : > { %v1771_v40 = vpop.f32.mrf.mxu2 }
  0xa8   : > { %v449_v2 = vpop.f32.mrf.mxu0 }
  0xa9   : > { %v769_v3 = vadd.f32 %v1735_v56, %v449_v2  ;;  %v1038_v2 = vld [vmem:[%s2112_s5 + $0x58] sm:$0xff] }
  0xaa   : > { %1051 = vmatpush.msrb.mxu0 %v1038_v2  ;;  %1403 = vmatpush.msra.mxu3 %v1038_v2 }
  0xab   : > { %v801_v10 = vmax.f32 %v769_v3, 0.0  ;;  %v1037_v3 = vld [vmem:[%s2112_s5 + $0x50] sm:$0xff] }
  0xac   : > { %1364 = vmatmul.msk.f32.gmra.mxu2 %vm326_vm0, %v1601_v28  ;;  %1052 = vmatpush.msrb.mxu0 %v1037_v3 }
  0xad   : > { %871 = vmatmul.f32.gmra.mxu3 %v801_v10  ;;  %v473_v10 = vpop.f32.mrf.mxu1 }
  0xae   : > { %1404 = vmatpush.msra.mxu3 %v1037_v3  ;;  %v777_v32 = vadd.f32 %v1735_v56, %v473_v10  ;;  %v1031_v3 = vld [vmem:[%s2112_s5 + $0x20] sm:$0xff]  ;;  %v1030_v10 = vld [vmem:[%s2112_s5 + $0x18] sm:$0xff] }
  0xaf   : > { %v1785_v61 = vpop.f32.mrf.mxu2 }
  0xb0   : > { %v452_v13 = vpop.f32.mrf.mxu0 }
  0xb1   : > { %v770_v14 = vadd.f32 %v1735_v56, %v452_v13 }
  0xb3   : > { %v802_v15 = vmax.f32 %v770_v14, 0.0  ;;  %v807_v14 = vmax.f32 %v775_v1, 0.0 }
  0xb4   : > { %1365 = vmatmul.msk.f32.gmra.mxu2 %vm326_vm0, %v1636_v37 }
  0xb5   : > { %874 = vmatmul.f32.gmra.mxu3 %v802_v15  ;;  %v1799_v15 = vpop.f32.mrf.mxu3 }
  0xb7   : > { %v1797_v13 = vpop.f32.mrf.mxu2 }
  0xb8   : > { %v455_v20 = vpop.f32.mrf.mxu0 }
  0xb9   : > { %v771_v21 = vadd.f32 %v1735_v56, %v455_v20  ;;  %v776_v20 = vadd.f32 %v1735_v56, %v470_v57 }
  0xbb   : > { %v803_v23 = vmax.f32 %v771_v21, 0.0  ;;  %v1036_v21 = vld [vmem:[%s2112_s5 + $0x48] sm:$0xff] }
  0xbc   : > { %1366 = vmatmul.msk.f32.gmra.mxu2 %vm326_vm0, %v1668_v45  ;;  %1053 = vmatpush.msrb.mxu0 %v1036_v21 }
  0xbd   : > { %877 = vmatmul.f32.gmra.mxu3 %v803_v23  ;;  %v318_v23 = vld [vmem:[%s2108_s1 + $0x20] sm:$0xff]  ;;  %v1821_v38 = vpop.f32.mrf.mxu3 }
  0xbe   : > { %550 = vmatpush.msrb.mxu1 %v318_v23  ;;  %1405 = vmatpush.msra.mxu3 %v1036_v21  ;;  %v1028_v23 = vld [vmem:[%s2112_s5 + $0x8] sm:$0xff] }
  0xbf   : > { %v1810_v24 = vpop.f32.mrf.mxu2 }
  0xc0   : > { %v458_v29 = vpop.f32.mrf.mxu0  ;;  %551 = vmatpush.msrb.mxu1 %v315_v60 }
  0xc1   : > { %v772_v31 = vadd.f32 %v1735_v56, %v458_v29  ;;  %v476_v29 = vpop.f32.mrf.mxu1  ;;  %1321 = vmatmul.msk.f32.vlgmr.msrb.gmra.mxu1 %vm326_vm0, %v1505_v4 }
  0xc2   : > { %v778_v57 = vadd.f32 %v1735_v56, %v476_v29  ;;  %v1027_v29 = vld [vmem:[%s2112_s5] sm:$0xff] }
  0xc3   : > { %v804_v33 = vmax.f32 %v772_v31, 0.0  ;;  %v808_v31 = vmax.f32 %v776_v20, 0.0  ;;  %v1029_v20 = vld [vmem:[%s2112_s5 + $0x10] sm:$0xff] }
  0xc4   : > { %1367 = vmatmul.msk.f32.gmra.mxu2 %vm326_vm0, %v1685_v48 }
  0xc5   : > { %880 = vmatmul.f32.gmra.mxu3 %v804_v33  ;;  %v1035_v33 = vld [vmem:[%s2112_s5 + $0x40] sm:$0xff] }
  0xc6   : > { %1054 = vmatpush.msrb.mxu0 %v1035_v33  ;;  %1406 = vmatpush.msra.mxu3 %v1035_v33 }
  0xc8   : > { %v461_v41 = vpop.f32.mrf.mxu0  ;;  %1055 = vmatpush.msrb.mxu0 %v1034_v35  ;;  %1407 = vmatpush.msra.mxu3 %v1034_v35 }
  0xc9   : > { %v773_v43 = vadd.f32 %v1735_v56, %v461_v41  ;;  %v1823_v41 = vpop.f32.mrf.mxu2  ;;  %1322 = vmatmul.msk.f32.gmra.mxu1 %vm326_vm0, %v1510_v5 }
  0xca   : > { %1056 = vmatpush.msrb.mxu0 %v1033_v58  ;;  %1408 = vmatpush.msra.mxu3 %v1033_v58 }
  0xcb   : > { %v805_v54 = vmax.f32 %v773_v43, 0.0  ;;  %v809_v43 = vmax.f32 %v777_v32, 0.0 }
  0xcc   : > { %1368 = vmatmul.msk.f32.gmra.mxu2 %vm326_vm0, %v1700_v51  ;;  %1057 = vmatpush.msrb.mxu0 %v1032_v59 }
  0xcd   : > { %883 = vmatmul.f32.gmra.mxu3 %v805_v54  ;;  %v479_v54 = vpop.f32.mrf.mxu1 }
  0xce   : > { %1409 = vmatpush.msra.mxu3 %v1032_v59  ;;  %v779_v2 = vadd.f32 %v1735_v56, %v479_v54  ;;  %1058 = vmatpush.msrb.mxu0 %v1031_v3 }
  0xd0   : > { %v464_v62 = vpop.f32.mrf.mxu0  ;;  %1410 = vmatpush.msra.mxu3 %v1031_v3  ;;  %1059 = vmatpush.msrb.mxu0 %v1030_v10 }
  0xd1   : > { %v774_v63 = vadd.f32 %v1735_v56, %v464_v62  ;;  %v1837_v62 = vpop.f32.mrf.mxu2  ;;  %1323 = vmatmul.msk.f32.gmra.mxu1 %vm326_vm0, %v1515_v6 }
  0xd2   : > { %1411 = vmatpush.msra.mxu3 %v1030_v10  ;;  %1060 = vmatpush.msrb.mxu0 %v1029_v20 }
  0xd3   : > { %v806_v0 = vmax.f32 %v774_v63, 0.0  ;;  %v1841_v63 = vpop.f32.mrf.mxu3 }
  0xd4   : > { %1369 = vmatmul.msk.f32.gmra.mxu2 %vm326_vm0, %v1712_v53  ;;  %1412 = vmatpush.msra.mxu3 %v1029_v20 }
  0xd5   : > { %886 = vmatmul.f32.gmra.mxu3 %v806_v0  ;;  %v810_v0 = vmax.f32 %v778_v57, 0.0  ;;  %v482_v1 = vpop.f32.mrf.mxu1  ;;  %1061 = vmatpush.msrb.mxu0 %v1028_v23 }
  0xd6   : > { %v780_v5 = vadd.f32 %v1735_v56, %v482_v1  ;;  %1413 = vmatpush.msra.mxu3 %v1028_v23 }
  0xd7   : > { %1062 = vmatpush.msrb.mxu0 %v1027_v29 }
  0xd8   : > { %1414 = vmatpush.msra.mxu3 %v1027_v29  ;;  %v812_v33 = vmax.f32 %v780_v5, 0.0  ;;  %v784_v5 = vadd.f32 %v1735_v56, %v1752_v17 }
  0xd9   : > { %v666_v4 = vpop.f32.mrf.mxu2  ;;  %1324 = vmatmul.msk.f32.gmra.mxu1 %vm326_vm0, %v1520_v7 }
  0xdb   : > { %v1857_v21 = vpop.f32.mrf.mxu3 }
  0xdc   : > { %1370 = vmatmul.msk.f32.gmra.mxu2 %vm326_vm0, %v1722_v55 }
  0xdd   : > { %889 = vmatmul.f32.gmra.mxu3 %v807_v14  ;;  %v811_v14 = vmax.f32 %v779_v2, 0.0  ;;  %v1890_v2 = vld [vmem:[%s2111_s4] ss:$0 sm:$0xff] }
  0xe1   : > { %v669_v32 = vpop.f32.mrf.mxu2  ;;  %1325 = vmatmul.msk.f32.gmra.mxu1 %vm326_vm0, %v1525_v8 }
  0xe3   : > { %v1870_v35 = vpop.f32.mrf.mxu3 }
  0xe4   : > { %1371 = vmatmul.msk.f32.gmra.mxu2 %vm326_vm0, %v1530_v9 }
  0xe5   : > { %892 = vmatmul.f32.gmra.mxu3 %v808_v31  ;;  %v485_v31 = vpop.f32.mrf.mxu1 }
  0xe9   : > { %v672_v54 = vpop.f32.mrf.mxu2  ;;  %1326 = vmatmul.msk.f32.gmra.mxu1 %vm326_vm0, %v1557_v16 }
  0xeb   : > { %v1880_v59 = vpop.f32.mrf.mxu3 }
  0xec   : > { %1372 = vmatmul.msk.f32.gmra.mxu2 %vm326_vm0, %v1563_v18 }
  0xed   : > { %895 = vmatmul.f32.gmra.mxu3 %v809_v43  ;;  %v781_v43 = vadd.f32 %v1735_v56, %v485_v31  ;;  %v488_v57 = vpop.f32.mrf.mxu1 }
  0xee   : > { %v782_v6 = vadd.f32 %v1735_v56, %v488_v57  ;;  %v785_v57 = vadd.f32 %v1735_v56, %v1760_v26 }
  0xef   : > { %v813_v58 = vmax.f32 %v781_v43, 0.0 }
  0xf1   : > { %v675_v60 = vpop.f32.mrf.mxu2  ;;  %1327 = vmatmul.msk.f32.gmra.mxu1 %vm326_vm0, %v1592_v25 }
  0xf4   : > { %1373 = vmatmul.msk.f32.gmra.mxu2 %vm326_vm0, %v1598_v27 }
  0xf5   : > { %898 = vmatmul.f32.gmra.mxu3 %v810_v0  ;;  %v814_v0 = vmax.f32 %v782_v6, 0.0  ;;  %v491_v1 = vpop.f32.mrf.mxu1  ;;  %v817_v6 = vmax.f32 %v785_v57, 0.0 }
  0xf6   : > { %v783_v7 = vadd.f32 %v1735_v56, %v491_v1  ;;  %v786_v1 = vadd.f32 %v1735_v56, %v1771_v40 }
  0xf8   : > { %v815_v8 = vmax.f32 %v783_v7, 0.0 }
  0xf9   : > { %v678_v3 = vpop.f32.mrf.mxu2  ;;  %1328 = vmatmul.msk.f32.gmra.mxu1 %vm326_vm0, %v1627_v34 }
  0xfc   : > { %1374 = vmatmul.msk.f32.gmra.mxu2 %vm326_vm0, %v1633_v36 }
  0xfd   : > { %901 = vmatmul.f32.gmra.mxu3 %v811_v14 }
 0x101   : > { %v681_v29 = vpop.f32.mrf.mxu2  ;;  %1329 = vmatmul.msk.f32.gmra.mxu1 %vm326_vm0, %v1659_v42 }
 0x104   : > { %1375 = vmatmul.msk.f32.gmra.mxu2 %vm326_vm0, %v1665_v44 }
 0x105   : > { %904 = vmatmul.f32.gmra.mxu3 %v812_v33  ;;  %v816_v33 = vmax.f32 %v784_v5, 0.0 }
 0x109   : > { %v684_v17 = vpop.f32.mrf.mxu2  ;;  %1330 = vmatmul.msk.f32.gmra.mxu1 %vm326_vm0, %v1536_v11 }
 0x10c   : > { %1376 = vmatmul.msk.f32.gmra.mxu2 %vm326_vm0, %v1682_v47 }
 0x10d   : > { %907 = vmatmul.f32.gmra.mxu3 %v813_v58 }
 0x111   : > { %v687_v26 = vpop.f32.mrf.mxu2  ;;  %1331 = vmatmul.msk.f32.gmra.mxu1 %vm326_vm0, %v1566_v19 }
 0x114   : > { %1377 = vmatmul.msk.f32.gmra.mxu2 %vm326_vm0, %v1697_v50 }
 0x115   : > { %910 = vmatmul.f32.gmra.mxu3 %v814_v0 }
 0x118   : > { %v863_v10 = vpop.f32.mrf.mxu3 }
 0x119   : > { %v864_v14 = vadd.f32 %v863_v10, %v666_v4  ;;  %v818_v10 = vmax.f32 %v786_v1, 0.0  ;;  %v690_v40 = vpop.f32.mrf.mxu2  ;;  %1332 = vmatmul.msk.f32.gmra.mxu1 %vm326_vm0, %v1601_v28 }
 0x11b   : > { %v963_v20 = vadd.f32 %v1890_v2, %v864_v14 }
 0x11c   : > { %1378 = vmatmul.msk.f32.gmra.mxu2 %vm326_vm0, %v1707_v52 }
 0x11d   : > { %913 = vmatmul.f32.gmra.mxu3 %v815_v8  ;;  %v995_v23 = vmax.f32 %v963_v20, 0.0  ;;  %v787_v8 = vadd.f32 %v1735_v56, %v1785_v61 }
 0x11f   : > { %1063 = vmatmul.f32.vlgmr.msrb.gmra.mxu0 %v995_v23  ;;  %v819_v23 = vmax.f32 %v787_v8, 0.0 }
 0x120   : > { %v866_v31 = vpop.f32.mrf.mxu3 }
 0x121   : > { %v867_v16 = vadd.f32 %v866_v31, %v669_v32  ;;  %v788_v31 = vadd.f32 %v1735_v56, %v1797_v13  ;;  %v693_v61 = vpop.f32.mrf.mxu2  ;;  %1333 = vmatmul.msk.f32.gmra.mxu1 %vm326_vm0, %v1636_v37 }
 0x123   : > { %v964_v4 = vadd.f32 %v1890_v2, %v867_v16 }
 0x124   : > { %1379 = vmatmul.msk.f32.gmra.mxu2 %vm326_vm0, %v1543_v12 }
 0x125   : > { %916 = vmatmul.f32.gmra.mxu3 %v816_v33  ;;  %v996_v43 = vmax.f32 %v964_v4, 0.0  ;;  %v820_v33 = vmax.f32 %v788_v31, 0.0 }
 0x127   : > { %1066 = vmatmul.f32.gmra.mxu0 %v996_v43  ;;  %v789_v43 = vadd.f32 %v1735_v56, %v1810_v24 }
 0x128   : > { %v869_v58 = vpop.f32.mrf.mxu3 }
 0x129   : > { %v870_v25 = vadd.f32 %v869_v58, %v672_v54  ;;  %v696_v13 = vpop.f32.mrf.mxu2  ;;  %v821_v58 = vmax.f32 %v789_v43, 0.0  ;;  %1334 = vmatmul.msk.f32.gmra.mxu1 %vm326_vm0, %v1668_v45  ;;  %v795_v43 = vadd.f32 %v1735_v56, %v1857_v21 }
 0x12b   : > { %v965_v32 = vadd.f32 %v1890_v2, %v870_v25 }
 0x12c   : > { %1380 = vmatmul.msk.f32.gmra.mxu2 %vm326_vm0, %v1577_v22 }
 0x12d   : > { %919 = vmatmul.f32.gmra.mxu3 %v817_v6  ;;  %v997_v0 = vmax.f32 %v965_v32, 0.0  ;;  %v790_v6 = vadd.f32 %v1735_v56, %v1823_v41 }
 0x12f   : > { %1069 = vmatmul.f32.gmra.mxu0 %v997_v0  ;;  %v822_v0 = vmax.f32 %v790_v6, 0.0 }
 0x130   : > { %v872_v7 = vpop.f32.mrf.mxu3 }
 0x131   : > { %v873_v34 = vadd.f32 %v872_v7, %v675_v60  ;;  %v699_v24 = vpop.f32.mrf.mxu2  ;;  %v791_v7 = vadd.f32 %v1735_v56, %v1837_v62  ;;  %1335 = vmatmul.msk.f32.gmra.mxu1 %vm326_vm0, %v1685_v48 }
 0x133   : > { %v966_v54 = vadd.f32 %v1890_v2, %v873_v34 }
 0x134   : > { %1381 = vmatmul.msk.f32.gmra.mxu2 %vm326_vm0, %v1609_v30 }
 0x135   : > { %922 = vmatmul.f32.gmra.mxu3 %v818_v10  ;;  %v998_v14 = vmax.f32 %v966_v54, 0.0  ;;  %v823_v10 = vmax.f32 %v791_v7, 0.0 }
 0x137   : > { %1072 = vmatmul.f32.gmra.mxu0 %v998_v14  ;;  %v792_v14 = vadd.f32 %v1735_v56, %v1799_v15 }
 0x138   : > { %v875_v20 = vpop.f32.mrf.mxu3 }
 0x139   : > { %v876_v42 = vadd.f32 %v875_v20, %v678_v3  ;;  %v702_v41 = vpop.f32.mrf.mxu2  ;;  %v824_v20 = vmax.f32 %v792_v14, 0.0  ;;  %1336 = vmatmul.msk.f32.gmra.mxu1 %vm326_vm0, %v1700_v51 }
 0x13b   : > { %v967_v60 = vadd.f32 %v1890_v2, %v876_v42 }
 0x13c   : > { %1382 = vmatmul.msk.f32.gmra.mxu2 %vm326_vm0, %v1644_v39 }
 0x13d   : > { %925 = vmatmul.f32.gmra.mxu3 %v819_v23  ;;  %v999_v5 = vmax.f32 %v967_v60, 0.0  ;;  %v793_v23 = vadd.f32 %v1735_v56, %v1821_v38 }
 0x13f   : > { %1075 = vmatmul.f32.gmra.mxu0 %v999_v5  ;;  %v825_v5 = vmax.f32 %v793_v23, 0.0 }
 0x140   : > { %v878_v16 = vpop.f32.mrf.mxu3 }
 0x141   : > { %v879_v11 = vadd.f32 %v878_v16, %v681_v29  ;;  %v705_v62 = vpop.f32.mrf.mxu2  ;;  %v794_v16 = vadd.f32 %v1735_v56, %v1841_v63  ;;  %1337 = vmatmul.msk.f32.gmra.mxu1 %vm326_vm0, %v1712_v53 }
 0x143   : > { %v968_v3 = vadd.f32 %v1890_v2, %v879_v11 }
 0x144   : > { %1383 = vmatmul.msk.f32.gmra.mxu2 %vm326_vm0, %v1673_v46 }
 0x145   : > { %928 = vmatmul.f32.gmra.mxu3 %v820_v33  ;;  %v1000_v4 = vmax.f32 %v968_v3, 0.0  ;;  %v826_v33 = vmax.f32 %v794_v16, 0.0 }
 0x147   : > { %1078 = vmatmul.f32.gmra.mxu0 %v1000_v4 }
 0x148   : > { %v881_v57 = vpop.f32.mrf.mxu3 }
 0x149   : > { %v882_v19 = vadd.f32 %v881_v57, %v684_v17  ;;  %v708_v15 = vpop.f32.mrf.mxu2  ;;  %1338 = vmatmul.msk.f32.gmra.mxu1 %vm326_vm0, %v1722_v55 }
 0x14b   : > { %v969_v29 = vadd.f32 %v1890_v2, %v882_v19  ;;  %v827_v19 = vmax.f32 %v795_v43, 0.0 }
 0x14c   : > { %1384 = vmatmul.msk.f32.gmra.mxu2 %vm326_vm0, %v1688_v49 }
 0x14d   : > { %931 = vmatmul.f32.gmra.mxu3 %v821_v58  ;;  %v1001_v25 = vmax.f32 %v969_v29, 0.0  ;;  %v553_v29 = vpop.f32.mrf.mxu1 }
 0x14f   : > { %1081 = vmatmul.f32.gmra.mxu0 %v1001_v25  ;;  %v796_v25 = vadd.f32 %v1735_v56, %v1870_v35 }
 0x150   : > { %v884_v32 = vpop.f32.mrf.mxu3 }
 0x151   : > { %v885_v28 = vadd.f32 %v884_v32, %v687_v26  ;;  %v711_v38 = vpop.f32.mrf.mxu2  ;;  %1339 = vmatmul.msk.f32.gmra.mxu1 %vm326_vm0, %v1530_v9  ;;  %v828_v55 = vmax.f32 %v796_v25, 0.0 }
 0x153   : > { %v970_v17 = vadd.f32 %v1890_v2, %v885_v28 }
 0x155   : > { %934 = vmatmul.f32.gmra.mxu3 %v822_v0  ;;  %v1002_v1 = vmax.f32 %v970_v17, 0.0  ;;  %v556_v0 = vpop.f32.mrf.mxu1  ;;  %v797_v17 = vadd.f32 %v1735_v56, %v1880_v59 }
 0x157   : > { %1084 = vmatmul.f32.gmra.mxu0 %v1002_v1  ;;  %v829_v7 = vmax.f32 %v797_v17, 0.0 }
 0x158   : > { %v887_v34 = vpop.f32.mrf.mxu3 }
 0x159   : > { %v888_v37 = vadd.f32 %v887_v34, %v690_v40  ;;  %1340 = vmatmul.msk.f32.gmra.mxu1 %vm326_vm0, %v1563_v18 }
 0x15b   : > { %v971_v26 = vadd.f32 %v1890_v2, %v888_v37 }
 0x15d   : > { %937 = vmatmul.f32.gmra.mxu3 %v823_v10  ;;  %v1003_v54 = vmax.f32 %v971_v26, 0.0  ;;  %v559_v37 = vpop.f32.mrf.mxu1 }
 0x15f   : > { %1087 = vmatmul.f32.gmra.mxu0 %v1003_v54 }
 0x160   : > { %v890_v8 = vpop.f32.mrf.mxu3 }
 0x161   : > { %v891_v45 = vadd.f32 %v890_v8, %v693_v61  ;;  %1341 = vmatmul.msk.f32.gmra.mxu1 %vm326_vm0, %v1598_v27  ;;  %v1995_v8 = vld [vmem:[%s2113_s6] ss:$0 sm:$0xff] }
 0x163   : > { %v972_v40 = vadd.f32 %v1890_v2, %v891_v45 }
 0x165   : > { %940 = vmatmul.f32.gmra.mxu3 %v824_v20  ;;  %v1004_v42 = vmax.f32 %v972_v40, 0.0  ;;  %v562_v18 = vpop.f32.mrf.mxu1 }
 0x167   : > { %1090 = vmatmul.f32.gmra.mxu0 %v1004_v42 }
 0x168   : > { %v893_v60 = vpop.f32.mrf.mxu3 }
 0x169   : > { %v894_v48 = vadd.f32 %v893_v60, %v696_v13  ;;  %v714_v13 = vpop.f32.mrf.mxu2  ;;  %1342 = vmatmul.msk.f32.gmra.mxu1 %vm326_vm0, %v1633_v36 }
 0x16b   : > { %v973_v31 = vadd.f32 %v1890_v2, %v894_v48 }
 0x16d   : > { %943 = vmatmul.f32.gmra.mxu3 %v825_v5  ;;  %v1005_v61 = vmax.f32 %v973_v31, 0.0  ;;  %v565_v42 = vpop.f32.mrf.mxu1 }
 0x16f   : > { %1093 = vmatmul.f32.gmra.mxu0 %v1005_v61 }
 0x170   : > { %v896_v11 = vpop.f32.mrf.mxu3 }
 0x171   : > { %v897_v51 = vadd.f32 %v896_v11, %v699_v24  ;;  %v717_v24 = vpop.f32.mrf.mxu2  ;;  %1343 = vmatmul.msk.f32.gmra.mxu1 %vm326_vm0, %v1665_v44 }
 0x173   : > { %v974_v3 = vadd.f32 %v1890_v2, %v897_v51 }
 0x175   : > { %946 = vmatmul.f32.gmra.mxu3 %v826_v33  ;;  %v1006_v4 = vmax.f32 %v974_v3, 0.0  ;;  %v568_v16 = vpop.f32.mrf.mxu1 }
 0x177   : > { %1096 = vmatmul.f32.gmra.mxu0 %v1006_v4 }
 0x178   : > { %v899_v63 = vpop.f32.mrf.mxu3 }
 0x179   : > { %v900_v57 = vadd.f32 %v899_v63, %v702_v41  ;;  %v720_v41 = vpop.f32.mrf.mxu2  ;;  %1344 = vmatmul.msk.f32.gmra.mxu1 %vm326_vm0, %v1682_v47 }
 0x17b   : > { %v975_v53 = vadd.f32 %v1890_v2, %v900_v57 }
 0x17d   : > { %949 = vmatmul.f32.gmra.mxu3 %v827_v19  ;;  %v1007_v58 = vmax.f32 %v975_v53, 0.0  ;;  %v571_v63 = vpop.f32.mrf.mxu1 }
 0x17f   : > { %1099 = vmatmul.f32.gmra.mxu0 %v1007_v58 }
 0x180   : > { %v902_v21 = vpop.f32.mrf.mxu3 }
 0x181   : > { %v903_v6 = vadd.f32 %v902_v21, %v705_v62  ;;  %v723_v54 = vpop.f32.mrf.mxu2  ;;  %1345 = vmatmul.msk.f32.gmra.mxu1 %vm326_vm0, %v1697_v50 }
 0x183   : > { %v976_v32 = vadd.f32 %v1890_v2, %v903_v6 }
 0x185   : > { %952 = vmatmul.f32.gmra.mxu3 %v828_v55  ;;  %v1008_v28 = vmax.f32 %v976_v32, 0.0  ;;  %v574_v21 = vpop.f32.mrf.mxu1 }
 0x187   : > { %1102 = vmatmul.f32.gmra.mxu0 %v1008_v28 }
 0x188   : > { %v905_v35 = vpop.f32.mrf.mxu3 }
 0x189   : > { %v906_v1 = vadd.f32 %v905_v35, %v708_v15  ;;  %v726_v15 = vpop.f32.mrf.mxu2  ;;  %1346 = vmatmul.msk.f32.gmra.mxu1 %vm326_vm0, %v1707_v52 }
 0x18b   : > { %v977_v9 = vadd.f32 %v1890_v2, %v906_v1 }
 0x18d   : > { %955 = vmatmul.f32.gmra.mxu3 %v829_v7  ;;  %v1009_v34 = vmax.f32 %v977_v9, 0.0  ;;  %v577_v17 = vpop.f32.mrf.mxu1 }
 0x18f   : > { %1105 = vmatmul.f32.gmra.mxu0 %v1009_v34 }
 0x190   : > { %v908_v10 = vpop.f32.mrf.mxu3 }
 0x191   : > { %v909_v56 = vadd.f32 %v908_v10, %v711_v38  ;;  %v729_v51 = vpop.f32.mrf.mxu2  ;;  %1347 = vmatmul.msk.f32.gmra.mxu1 %vm326_vm0, %v1543_v12 }
 0x193   : > { %v978_v59 = vadd.f32 %v1890_v2, %v909_v56 }
 0x195   : > { %v1010_v26 = vmax.f32 %v978_v59, 0.0  ;;  %v580_v10 = vpop.f32.mrf.mxu1 }
 0x197   : > { %1108 = vmatmul.f32.gmra.mxu0 %v1010_v26 }
 0x198   : > { %v911_v14 = vpop.f32.mrf.mxu3 }
 0x199   : > { %v912_v62 = vadd.f32 %v911_v14, %v714_v13  ;;  %v732_v58 = vpop.f32.mrf.mxu2  ;;  %1348 = vmatmul.msk.f32.gmra.mxu1 %vm326_vm0, %v1577_v22 }
 0x19b   : > { %v979_v27 = vadd.f32 %v1890_v2, %v912_v62 }
 0x19c   : > { %v1064_v45 = vpop.f32.mrf.mxu0 }
 0x19d   : > { %v1011_v20 = vmax.f32 %v979_v27, 0.0  ;;  %v1065_v40 = vadd.f32 %v1995_v8, %v1064_v45  ;;  %v583_v27 = vpop.f32.mrf.mxu1 }
 0x19f   : > { %v1160_v36 = vadd.f32 %v1065_v40, %v553_v29  ;;  %1111 = vmatmul.f32.gmra.mxu0 %v1011_v20 }
 0x1a0   : > { %v914_v23 = vpop.f32.mrf.mxu3 }
 0x1a1   : > { %1192 = vst [vmem:[%s2004_s26] sm:$0xff] %v1160_v36  ;;  %v915_v60 = vadd.f32 %v914_v23, %v717_v24  ;;  %v735_v35 = vpop.f32.mrf.mxu2  ;;  %1349 = vmatmul.msk.f32.gmra.mxu1 %vm326_vm0, %v1609_v30 }
 0x1a3   : > { %v980_v48 = vadd.f32 %v1890_v2, %v915_v60 }
 0x1a4   : > { %v1067_v5 = vpop.f32.mrf.mxu0 }
 0x1a5   : > { %v1012_v31 = vmax.f32 %v980_v48, 0.0  ;;  %v1068_v61 = vadd.f32 %v1995_v8, %v1067_v5  ;;  %v586_v60 = vpop.f32.mrf.mxu1 }
 0x1a7   : > { %v1161_v38 = vadd.f32 %v1068_v61, %v556_v0  ;;  %1114 = vmatmul.f32.gmra.mxu0 %v1012_v31 }
 0x1a8   : > { %v917_v11 = vpop.f32.mrf.mxu3 }
 0x1a9   : > { %1193 = vst [vmem:[%s2004_s26 + $0x8] sm:$0xff] %v1161_v38  ;;  %v918_v44 = vadd.f32 %v917_v11, %v720_v41  ;;  %v738_v26 = vpop.f32.mrf.mxu2  ;;  %1350 = vmatmul.msk.f32.gmra.mxu1 %vm326_vm0, %v1644_v39 }
 0x1ab   : > { %v981_v33 = vadd.f32 %v1890_v2, %v918_v44 }
 0x1ac   : > { %v1070_v3 = vpop.f32.mrf.mxu0 }
 0x1ad   : > { %v1013_v4 = vmax.f32 %v981_v33, 0.0  ;;  %v1071_v43 = vadd.f32 %v1995_v8, %v1070_v3  ;;  %v589_v44 = vpop.f32.mrf.mxu1 }
 0x1af   : > { %v1162_v13 = vadd.f32 %v1071_v43, %v559_v37  ;;  %1117 = vmatmul.f32.gmra.mxu0 %v1013_v4 }
 0x1b0   : > { %v920_v57 = vpop.f32.mrf.mxu3 }
 0x1b1   : > { %1194 = vst [vmem:[%s2004_s26 + $0x10] sm:$0xff] %v1162_v13  ;;  %v921_v47 = vadd.f32 %v920_v57, %v723_v54  ;;  %v741_v40 = vpop.f32.mrf.mxu2  ;;  %1351 = vmatmul.msk.f32.gmra.mxu1 %vm326_vm0, %v1673_v46 }
 0x1b3   : > { %v982_v19 = vadd.f32 %v1890_v2, %v921_v47 }
 0x1b4   : > { %v1073_v53 = vpop.f32.mrf.mxu0 }
 0x1b5   : > { %v1014_v29 = vmax.f32 %v982_v19, 0.0  ;;  %v1074_v25 = vadd.f32 %v1995_v8, %v1073_v53  ;;  %v592_v13 = vpop.f32.mrf.mxu1 }
 0x1b7   : > { %v1163_v6 = vadd.f32 %v1074_v25, %v562_v18  ;;  %1120 = vmatmul.f32.gmra.mxu0 %v1014_v29 }
 0x1b8   : > { %v923_v24 = vpop.f32.mrf.mxu3 }
 0x1b9   : > { %1195 = vst [vmem:[%s2004_s26 + $0x18] sm:$0xff] %v1163_v6  ;;  %v924_v50 = vadd.f32 %v923_v24, %v726_v15  ;;  %1352 = vmatmul.msk.f32.gmra.mxu1 %vm326_vm0, %v1688_v49 }
 0x1bb   : > { %v983_v55 = vadd.f32 %v1890_v2, %v924_v50 }
 0x1bc   : > { %v1076_v32 = vpop.f32.mrf.mxu0 }
 0x1bd   : > { %v1015_v28 = vmax.f32 %v983_v55, 0.0  ;;  %v1077_v0 = vadd.f32 %v1995_v8, %v1076_v32 }
 0x1bf   : > { %v1164_v1 = vadd.f32 %v1077_v0, %v565_v42  ;;  %1123 = vmatmul.f32.gmra.mxu0 %v1015_v28 }
 0x1c0   : > { %v926_v7 = vpop.f32.mrf.mxu3 }
 0x1c1   : > { %1196 = vst [vmem:[%s2004_s26 + $0x20] sm:$0xff] %v1164_v1  ;;  %v927_v52 = vadd.f32 %v926_v7, %v729_v51 }
 0x1c3   : > { %v984_v9 = vadd.f32 %v1890_v2, %v927_v52 }
 0x1c4   : > { %v1079_v41 = vpop.f32.mrf.mxu0 }
 0x1c5   : > { %v1016_v34 = vmax.f32 %v984_v9, 0.0  ;;  %v1080_v37 = vadd.f32 %v1995_v8, %v1079_v41 }
 0x1c7   : > { %v1165_v56 = vadd.f32 %v1080_v37, %v568_v16  ;;  %1126 = vmatmul.f32.gmra.mxu0 %v1016_v34  ;;  %v744_v16 = vpop.f32.mrf.mxu2 }
 0x1c8   : > { %v929_v59 = vpop.f32.mrf.mxu3 }
 0x1c9   : > { %1197 = vst [vmem:[%s2004_s26 + $0x28] sm:$0xff] %v1165_v56  ;;  %v930_v12 = vadd.f32 %v929_v59, %v732_v58 }
 0x1cb   : > { %v985_v18 = vadd.f32 %v1890_v2, %v930_v12 }
 0x1cc   : > { %v1082_v54 = vpop.f32.mrf.mxu0 }
 0x1cd   : > { %v1017_v14 = vmax.f32 %v985_v18, 0.0  ;;  %v1083_v62 = vadd.f32 %v1995_v8, %v1082_v54 }
 0x1cf   : > { %v1166_v45 = vadd.f32 %v1083_v62, %v571_v63  ;;  %1129 = vmatmul.f32.gmra.mxu0 %v1017_v14  ;;  %v747_v57 = vpop.f32.mrf.mxu2 }
 0x1d0   : > { %v932_v20 = vpop.f32.mrf.mxu3 }
 0x1d1   : > { %1198 = vst [vmem:[%s2004_s26 + $0x30] sm:$0xff] %v1166_v45  ;;  %v933_v22 = vadd.f32 %v932_v20, %v735_v35 }
 0x1d3   : > { %v986_v42 = vadd.f32 %v1890_v2, %v933_v22 }
 0x1d4   : > { %v1085_v36 = vpop.f32.mrf.mxu0 }
 0x1d5   : > { %v1018_v23 = vmax.f32 %v986_v42, 0.0  ;;  %v1086_v15 = vadd.f32 %v1995_v8, %v1085_v36 }
 0x1d7   : > { %v1167_v48 = vadd.f32 %v1086_v15, %v574_v21  ;;  %1132 = vmatmul.f32.gmra.mxu0 %v1018_v23  ;;  %v595_v21 = vpop.f32.mrf.mxu1  ;;  %v750_v50 = vpop.f32.mrf.mxu2 }
 0x1d8   : > { %v935_v5 = vpop.f32.mrf.mxu3 }
 0x1d9   : > { %1199 = vst [vmem:[%s2004_s26 + $0x38] sm:$0xff] %v1167_v48  ;;  %v936_v30 = vadd.f32 %v935_v5, %v738_v26 }
 0x1db   : > { %v987_v31 = vadd.f32 %v1890_v2, %v936_v30 }
 0x1dc   : > { %v1088_v61 = vpop.f32.mrf.mxu0 }
 0x1dd   : > { %v1019_v38 = vmax.f32 %v987_v31, 0.0  ;;  %v1089_v11 = vadd.f32 %v1995_v8, %v1088_v61 }
 0x1df   : > { %v1168_v51 = vadd.f32 %v1089_v11, %v577_v17  ;;  %1135 = vmatmul.f32.gmra.mxu0 %v1019_v38  ;;  %v598_v17 = vpop.f32.mrf.mxu1  ;;  %v753_v52 = vpop.f32.mrf.mxu2 }
 0x1e0   : > { %v938_v33 = vpop.f32.mrf.mxu3 }
 0x1e1   : > { %1200 = vst [vmem:[%s2004_s26 + $0x40] sm:$0xff] %v1168_v51  ;;  %v939_v39 = vadd.f32 %v938_v33, %v741_v40 }
 0x1e3   : > { %v988_v3 = vadd.f32 %v1890_v2, %v939_v39 }
 0x1e4   : > { %v1091_v4 = vpop.f32.mrf.mxu0 }
 0x1e5   : > { %v1020_v43 = vmax.f32 %v988_v3, 0.0  ;;  %v1092_v63 = vadd.f32 %v1995_v8, %v1091_v4 }
 0x1e7   : > { %v1169_v47 = vadd.f32 %v1092_v63, %v580_v10  ;;  %1138 = vmatmul.f32.gmra.mxu0 %v1020_v43  ;;  %v601_v59 = vpop.f32.mrf.mxu1  ;;  %v756_v54 = vpop.f32.mrf.mxu2 }
 0x1e8   : > { %v941_v19 = vpop.f32.mrf.mxu3 }
 0x1e9   : > { %1201 = vst [vmem:[%s2004_s26 + $0x48] sm:$0xff] %v1169_v47  ;;  %v942_v46 = vadd.f32 %v941_v19, %v744_v16 }
 0x1eb   : > { %v989_v53 = vadd.f32 %v1890_v2, %v942_v46 }
 0x1ec   : > { %v1094_v58 = vpop.f32.mrf.mxu0 }
 0x1ed   : > { %v1021_v29 = vmax.f32 %v989_v53, 0.0  ;;  %v1095_v25 = vadd.f32 %v1995_v8, %v1094_v58 }
 0x1ef   : > { %v1170_v6 = vadd.f32 %v1095_v25, %v583_v27  ;;  %1141 = vmatmul.f32.gmra.mxu0 %v1021_v29  ;;  %v604_v22 = vpop.f32.mrf.mxu1  ;;  %v759_v15 = vpop.f32.mrf.mxu2 }
 0x1f0   : > { %v944_v24 = vpop.f32.mrf.mxu3 }
 0x1f1   : > { %1202 = vst [vmem:[%s2004_s26 + $0x50] sm:$0xff] %v1170_v6  ;;  %v945_v55 = vadd.f32 %v944_v24, %v747_v57 }
 0x1f3   : > { %v990_v32 = vadd.f32 %v1890_v2, %v945_v55 }
 0x1f4   : > { %v1097_v49 = vpop.f32.mrf.mxu0 }
 0x1f5   : > { %v1022_v28 = vmax.f32 %v990_v32, 0.0  ;;  %v1098_v0 = vadd.f32 %v1995_v8, %v1097_v49 }
 0x1f7   : > { %v1171_v35 = vadd.f32 %v1098_v0, %v586_v60  ;;  %1144 = vmatmul.f32.gmra.mxu0 %v1022_v28  ;;  %v607_v61 = vpop.f32.mrf.mxu1 }
 0x1f8   : > { %v947_v1 = vpop.f32.mrf.mxu3 }
 0x1f9   : > { %1203 = vst [vmem:[%s2004_s26 + $0x58] sm:$0xff] %v1171_v35  ;;  %v948_v7 = vadd.f32 %v947_v1, %v750_v50 }
 0x1fb   : > { %v991_v9 = vadd.f32 %v1890_v2, %v948_v7 }
 0x1fc   : > { %v1100_v41 = vpop.f32.mrf.mxu0 }
 0x1fd   : > { %v1023_v34 = vmax.f32 %v991_v9, 0.0  ;;  %v1101_v37 = vadd.f32 %v1995_v8, %v1100_v41 }
 0x1ff   : > { %v1172_v10 = vadd.f32 %v1101_v37, %v589_v44  ;;  %1147 = vmatmul.f32.gmra.mxu0 %v1023_v34  ;;  %v610_v33 = vpop.f32.mrf.mxu1 }
 0x200   : > { %v950_v56 = vpop.f32.mrf.mxu3 }
 0x201   : > { %1204 = vst [vmem:[%s2004_s26 + $0x60] sm:$0xff] %v1172_v10  ;;  %v951_v26 = vadd.f32 %v950_v56, %v753_v52 }
 0x203   : > { %v992_v12 = vadd.f32 %v1890_v2, %v951_v26 }
 0x204   : > { %v1103_v18 = vpop.f32.mrf.mxu0 }
 0x205   : > { %v1024_v14 = vmax.f32 %v992_v12, 0.0  ;;  %v1104_v62 = vadd.f32 %v1995_v8, %v1103_v18 }
 0x207   : > { %v1173_v27 = vadd.f32 %v1104_v62, %v592_v13  ;;  %1150 = vmatmul.f32.gmra.mxu0 %v1024_v14  ;;  %v613_v43 = vpop.f32.mrf.mxu1 }
 0x208   : > { %v953_v45 = vpop.f32.mrf.mxu3 }
 0x209   : > { %1205 = vst [vmem:[%s2004_s26 + $0x68] sm:$0xff] %v1173_v27  ;;  %v954_v20 = vadd.f32 %v953_v45, %v756_v54 }
 0x20b   : > { %v993_v40 = vadd.f32 %v1890_v2, %v954_v20 }
 0x20c   : > { %v1106_v42 = vpop.f32.mrf.mxu0 }
 0x20d   : > { %v1025_v36 = vmax.f32 %v993_v40, 0.0  ;;  %v1107_v23 = vadd.f32 %v1995_v8, %v1106_v42 }
 0x20f   : > { %v1174_v60 = vadd.f32 %v1107_v23, %v595_v21  ;;  %1153 = vmatmul.f32.gmra.mxu0 %v1025_v36  ;;  %v616_v47 = vpop.f32.mrf.mxu1 }
 0x210   : > { %v956_v48 = vpop.f32.mrf.mxu3 }
 0x211   : > { %1206 = vst [vmem:[%s2004_s26 + $0x70] sm:$0xff] %v1174_v60  ;;  %v957_v5 = vadd.f32 %v956_v48, %v759_v15 }
 0x213   : > { %v994_v30 = vadd.f32 %v1890_v2, %v957_v5 }
 0x214   : > { %v1109_v31 = vpop.f32.mrf.mxu0 }
 0x215   : > { %v1026_v16 = vmax.f32 %v994_v30, 0.0  ;;  %v1110_v38 = vadd.f32 %v1995_v8, %v1109_v31 }
 0x217   : > { %v1175_v11 = vadd.f32 %v1110_v38, %v598_v17  ;;  %1156 = vmatmul.f32.vlgmr.msra.gmra.mxu3 %v1026_v16  ;;  %v619_v29 = vpop.f32.mrf.mxu1 }
 0x219   : > { %1207 = vst [vmem:[%s2004_s26 + $0x78] sm:$0xff] %v1175_v11 }
 0x21c   : > { %v1112_v44 = vpop.f32.mrf.mxu0 }
 0x21d   : > { %v1113_v51 = vadd.f32 %v1995_v8, %v1112_v44 }
 0x21f   : > { %v1176_v39 = vadd.f32 %v1113_v51, %v601_v59  ;;  %v622_v50 = vpop.f32.mrf.mxu1 }
 0x221   : > { %1208 = vst [vmem:[%s2004_s26 + $0x80] sm:$0xff] %v1176_v39 }
 0x224   : > { %v1115_v3 = vpop.f32.mrf.mxu0 }
 0x225   : > { %v1116_v2 = vadd.f32 %v1995_v8, %v1115_v3 }
 0x227   : > { %v1177_v4 = vadd.f32 %v1116_v2, %v604_v22  ;;  %v625_v0 = vpop.f32.mrf.mxu1 }
 0x229   : > { %1209 = vst [vmem:[%s2004_s26 + $0x88] sm:$0xff] %v1177_v4 }
 0x22c   : > { %v1118_v63 = vpop.f32.mrf.mxu0 }
 0x22d   : > { %v1119_v13 = vadd.f32 %v1995_v8, %v1118_v63 }
 0x22f   : > { %v1178_v57 = vadd.f32 %v1119_v13, %v607_v61  ;;  %v628_v7 = vpop.f32.mrf.mxu1 }
 0x231   : > { %1210 = vst [vmem:[%s2004_s26 + $0x90] sm:$0xff] %v1178_v57 }
 0x234   : > { %v1121_v19 = vpop.f32.mrf.mxu0 }
 0x235   : > { %v1122_v46 = vadd.f32 %v1995_v8, %v1121_v19 }
 0x237   : > { %v1179_v53 = vadd.f32 %v1122_v46, %v610_v33  ;;  %v631_v37 = vpop.f32.mrf.mxu1 }
 0x239   : > { %1211 = vst [vmem:[%s2004_s26 + $0x98] sm:$0xff] %v1179_v53 }
 0x23c   : > { %v1124_v58 = vpop.f32.mrf.mxu0 }
 0x23d   : > { %v1125_v25 = vadd.f32 %v1995_v8, %v1124_v58 }
 0x23f   : > { %v1180_v21 = vadd.f32 %v1125_v25, %v613_v43  ;;  %v634_v12 = vpop.f32.mrf.mxu1 }
 0x241   : > { %1212 = vst [vmem:[%s2004_s26 + $0xa0] sm:$0xff] %v1180_v21 }
 0x244   : > { %v1127_v6 = vpop.f32.mrf.mxu0 }
 0x245   : > { %v1128_v24 = vadd.f32 %v1995_v8, %v1127_v6 }
 0x247   : > { %v1181_v55 = vadd.f32 %v1128_v24, %v616_v47  ;;  %v637_v27 = vpop.f32.mrf.mxu1 }
 0x249   : > { %1213 = vst [vmem:[%s2004_s26 + $0xa8] sm:$0xff] %v1181_v55 }
 0x24c   : > { %v1130_v32 = vpop.f32.mrf.mxu0 }
 0x24d   : > { %v1131_v49 = vadd.f32 %v1995_v8, %v1130_v32 }
 0x24f   : > { %v1182_v28 = vadd.f32 %v1131_v49, %v619_v29  ;;  %v640_v40 = vpop.f32.mrf.mxu1 }
 0x251   : > { %1214 = vst [vmem:[%s2004_s26 + $0xb0] sm:$0xff] %v1182_v28 }
 0x254   : > { %v1133_v17 = vpop.f32.mrf.mxu0 }
 0x255   : > { %v1134_v35 = vadd.f32 %v1995_v8, %v1133_v17 }
 0x257   : > { %v1183_v1 = vadd.f32 %v1134_v35, %v622_v50  ;;  %v643_v60 = vpop.f32.mrf.mxu1 }
 0x259   : > { %1215 = vst [vmem:[%s2004_s26 + $0xb8] sm:$0xff] %v1183_v1 }
 0x25c   : > { %v1136_v52 = vpop.f32.mrf.mxu0 }
 0x25d   : > { %v1137_v9 = vadd.f32 %v1995_v8, %v1136_v52 }
 0x25f   : > { %v1184_v41 = vadd.f32 %v1137_v9, %v625_v0  ;;  %v646_v31 = vpop.f32.mrf.mxu1 }
 0x261   : > { %1216 = vst [vmem:[%s2004_s26 + $0xc0] sm:$0xff] %v1184_v41 }
 0x264   : > { %v1139_v34 = vpop.f32.mrf.mxu0 }
 0x265   : > { %v1140_v10 = vadd.f32 %v1995_v8, %v1139_v34 }
 0x267   : > { %v1185_v56 = vadd.f32 %v1140_v10, %v628_v7 }
 0x269   : > { %1217 = vst [vmem:[%s2004_s26 + $0xc8] sm:$0xff] %v1185_v56 }
 0x26c   : > { %v1142_v59 = vpop.f32.mrf.mxu0 }
 0x26d   : > { %v1143_v26 = vadd.f32 %v1995_v8, %v1142_v59 }
 0x26f   : > { %v1186_v18 = vadd.f32 %v1143_v26, %v631_v37 }
 0x271   : > { %1218 = vst [vmem:[%s2004_s26 + $0xd0] sm:$0xff] %v1186_v18 }
 0x274   : > { %v1145_v54 = vpop.f32.mrf.mxu0 }
 0x275   : > { %v1146_v14 = vadd.f32 %v1995_v8, %v1145_v54 }
 0x277   : > { %v1187_v62 = vadd.f32 %v1146_v14, %v634_v12 }
 0x279   : > { %1219 = vst [vmem:[%s2004_s26 + $0xd8] sm:$0xff] %v1187_v62 }
 0x27c   : > { %v1148_v45 = vpop.f32.mrf.mxu0 }
 0x27d   : > { %v1149_v20 = vadd.f32 %v1995_v8, %v1148_v45 }
 0x27f   : > { %v1188_v22 = vadd.f32 %v1149_v20, %v637_v27 }
 0x281   : > { %1220 = vst [vmem:[%s2004_s26 + $0xe0] sm:$0xff] %v1188_v22 }
 0x284   : > { %v1151_v42 = vpop.f32.mrf.mxu0 }
 0x285   : > { %v1152_v36 = vadd.f32 %v1995_v8, %v1151_v42 }
 0x287   : > { %v1189_v23 = vadd.f32 %v1152_v36, %v640_v40 }
 0x289   : > { %1221 = vst [vmem:[%s2004_s26 + $0xe8] sm:$0xff] %v1189_v23 }
 0x28c   : > { %v1154_v15 = vpop.f32.mrf.mxu0 }
 0x28d   : > { %v1155_v48 = vadd.f32 %v1995_v8, %v1154_v15 }
 0x28f   : > { %v1190_v5 = vadd.f32 %v1155_v48, %v643_v60 }
 0x291   : > { %1222 = vst [vmem:[%s2004_s26 + $0xf0] sm:$0xff] %v1190_v5 }
 0x29a   : > { %v1157_v30 = vpop.f32.mrf.mxu3 }
 0x29b   : > { %v1158_v61 = vadd.f32 %v1995_v8, %v1157_v30 }
 0x29d   : > { %v1191_v16 = vadd.f32 %v1158_v61, %v646_v31 }
 0x29f   : > { %1223 = vst [vmem:[%s2004_s26 + $0xf8] sm:$0xff] %v1191_v16 }
 0x2a0 PF: > { %s17_s24 = sadd.s32 1, %s1432_s24  }
 0x2a1   : > { %p14_p4 = scmp.ge.s32.totalorder %s17_s24, 4  }
 0x2a3   :  { %16 = sbr.rel (!%p14_p4) target bundleno = 1 (0x1), region = 78 }

</bundles_post_ra>
